<compile_context>
chip_gen: v5e
topology: v5e:2x2
jax: 0.10.0
libtpu: 0.0.40
codegen_flags: <defaults>
</compile_context>

<pallas_src>
from collections import OrderedDict

import jax
import jax.numpy as jnp
import numpy as np
from jax.experimental import pallas as pl
from jax.experimental.pallas import tpu as pltpu


_DEFAULT_TILE_M = 512      # ~85% of HBM roofline for a mem-bound stream; multiple of 8.
_VPU_SUPP_MAX = 16         # supplement widths up to this use unrolled VPU FMAs, else MXU.


def _round_up(x, m):
    return ((x + m - 1) // m) * m


def _pad_last(a, n_pad):
    pad = n_pad - a.shape[-1]
    if pad == 0:
        return a
    return jnp.pad(a, [(0, 0)] * (a.ndim - 1) + [(0, pad)])


def _fused_supplement_linear_kernel(x_ref, s_ref, wx_ref, ws_ref, b_ref, o_ref):
    """out = x @ Wx + supp @ Ws + b  (the concat([x, supp], -1) @ W head, fused).

    The main x @ Wx runs on the MXU with f32 accumulation. The supplement term is
    only a handful of channels, so it is done as unrolled broadcast FMAs on the
    VPU (otherwise-idle VALU slots) rather than a second, near-empty MXU matmul.
    """
    acc = jnp.dot(x_ref[...], wx_ref[...], preferred_element_type=jnp.float32)

    c_supp = s_ref.shape[-1]  # static
    if c_supp <= _VPU_SUPP_MAX:
        s = s_ref[...].astype(jnp.float32)
        ws = ws_ref[...].astype(jnp.float32)
        for k in range(c_supp):  # unrolled at trace time (c_supp is tiny & static)
            acc = acc + s[:, k:k + 1] * ws[k:k + 1, :]
    else:
        acc = acc + jnp.dot(s_ref[...], ws_ref[...], preferred_element_type=jnp.float32)

    o_ref[...] = (acc + b_ref[...]).astype(o_ref.dtype)


def fused_supplement_linear(x, supp, w_x, w_s, b_row, c_out, *,
                            tile_m=_DEFAULT_TILE_M, out_dtype=None):
    """Computes concat([x, supp], -1) @ W + b without materializing the concat.

    x     : [M, C_in]          activation stream (dominant HBM traffic)
    supp  : [M, C_supp]        small per-row supplement features
    w_x   : [C_in,  N_pad]     row-split, lane-padded (N_pad % 128 == 0) weights
    w_s   : [C_supp, N_pad]
    b_row : [1, N_pad]         lane-padded bias (float32)
    Returns [M, c_out] (the lane padding is sliced off outside the kernel).
    """
    m, c_in = x.shape
    c_supp = supp.shape[-1]
    n_pad = w_x.shape[-1]
    if out_dtype is None:
        out_dtype = x.dtype

    # Tile over M so the x-stream pipelines HBM->VMEM against the MXU.  Small M
    # (e.g. the demo shapes) falls back to one full-array block, which still
    # satisfies the (8, 128) rule because block dims equal the array dims.
    tm = m if m <= tile_m else tile_m
    grid_m = pl.cdiv(m, tm)

    out = pl.pallas_call(
        _fused_supplement_linear_kernel,
        out_shape=jax.ShapeDtypeStruct((m, n_pad), out_dtype),
        grid=(grid_m,),
        in_specs=[
            # Streamed operands: new block per grid step (double-buffered).
            pl.BlockSpec((tm, c_in), lambda i: (i, 0)),
            pl.BlockSpec((tm, c_supp), lambda i: (i, 0)),
            # Weights / bias: constant block index -> stay VMEM-resident.
            pl.BlockSpec((c_in, n_pad), lambda i: (0, 0)),
            pl.BlockSpec((c_supp, n_pad), lambda i: (0, 0)),
            pl.BlockSpec((1, n_pad), lambda i: (0, 0)),
        ],
        out_specs=pl.BlockSpec((tm, n_pad), lambda i: (i, 0)),
        compiler_params=pltpu.CompilerParams(
            # Rows are fully independent -> megacore sharding on v7x; no-op cost
            # on v5e/v6e.
            dimension_semantics=("parallel",)),
    )(x, supp, w_x, w_s, b_row)
    return out[:, :c_out]


class MultiPredictionHeadPallas:
    """JAX/Pallas port of MultiPredictionHead with two concrete linear heads:

      - 'token_pred'  : consumes ('bert', 'sequence', -1) + token supplements
      - 'pooled_pred' : consumes ('bert', 'pooled', -1)   + pooled supplements
    """

    def __init__(self, in_channels, num_in_layers, dropout_prob,
                 token_supplemental_key_to_shape, pooled_supplemental_key_to_shape,
                 token_head_out, pooled_head_out, key, compute_dtype=None):
        self.in_channels = in_channels
        self.num_in_layers = num_in_layers
        self.dropout_prob = dropout_prob  # eval mode -> identity
        self.token_supplemental_key_to_shape = OrderedDict(token_supplemental_key_to_shape)
        self.pooled_supplemental_key_to_shape = OrderedDict(pooled_supplemental_key_to_shape)
        self.token_head_out = token_head_out
        self.pooled_head_out = pooled_head_out
        # Optional: set to jnp.bfloat16 on v6e/v7x to halve HBM traffic for the
        # dominant x read (MXU still accumulates in f32).  Kept None (f32) here so
        # the demo matches the f32 reference to 1e-5.
        self.compute_dtype = compute_dtype

        tok_supp_channels = sum(int(np.prod(s)) for s in self.token_supplemental_key_to_shape.values())
        pool_supp_channels = sum(int(np.prod(s)) for s in self.pooled_supplemental_key_to_shape.values())
        c_tok = in_channels + tok_supp_channels
        c_pool = in_channels + pool_supp_channels

        k1, k2, k3, k4 = jax.random.split(key, 4)
        scale_tok = 1.0 / np.sqrt(c_tok)
        scale_pool = 1.0 / np.sqrt(c_pool)
        self.w_token = jax.random.normal(k1, (c_tok, token_head_out), jnp.float32) * scale_tok
        self.b_token = jax.random.normal(k2, (token_head_out,), jnp.float32) * scale_tok
        self.w_pooled = jax.random.normal(k3, (c_pool, pooled_head_out), jnp.float32) * scale_pool
        self.b_pooled = jax.random.normal(k4, (pooled_head_out,), jnp.float32) * scale_pool

        # --- hoisted kernel parameters (row-split + lane padding done once, not per call) ---
        w_dtype = jnp.float32 if compute_dtype is None else compute_dtype
        n_tok_pad = _round_up(token_head_out, 128)  # lane-dense output -> unmasked stores
        self.wx_token = _pad_last(self.w_token[:in_channels], n_tok_pad).astype(w_dtype)
        self.ws_token = _pad_last(self.w_token[in_channels:], n_tok_pad).astype(w_dtype)
        self.b_token_pad = _pad_last(self.b_token.reshape(1, -1), n_tok_pad).astype(jnp.float32)

        # Pooled head is a tiny (B, C) @ (C, out) matmul; left to plain XLA (a
        # dedicated pallas_call is dominated by launch overhead).  Still concat-free
        # via pre-split weights.
        self.wx_pooled = self.w_pooled[:in_channels]
        self.ws_pooled = self.w_pooled[in_channels:]

    def __call__(self, sequence_output, pooled_output, batch):
        # LazyBertOutputBatch[('bert', 'sequence', -1)]: dropout(seq[-1]) -> identity (eval),
        # then BertOutputSupplement concatenates flattened batch features on the
        # channel axis; the concat is fused into the linear head kernel.
        x_seq = sequence_output[-1]                       # (B, S, C)
        b, s, c = x_seq.shape

        tok_supps = []
        for key_name, shp in self.token_supplemental_key_to_shape.items():
            v = batch[key_name]
            tok_supps.append(v.reshape(b, s, int(np.prod(shp))).astype(x_seq.dtype))
        tok_supp = tok_supps[0] if len(tok_supps) == 1 else jnp.concatenate(tok_supps, axis=-1)

        x2d = x_seq.reshape(b * s, c)
        s2d = tok_supp.reshape(b * s, -1)
        if self.compute_dtype is not None:
            x2d = x2d.astype(self.compute_dtype)
            s2d = s2d.astype(self.compute_dtype)

        token_pred = fused_supplement_linear(
            x2d, s2d, self.wx_token, self.ws_token, self.b_token_pad,
            self.token_head_out, out_dtype=x_seq.dtype,
        ).reshape(b, s, self.token_head_out)

        # LazyBertOutputBatch[('bert', 'pooled', -1)]: dropout(pooled_output) -> identity (eval),
        # plus pooled supplements flattened per example.
        pool_supps = []
        for key_name, shp in self.pooled_supplemental_key_to_shape.items():
            v = batch[key_name]
            pool_supps.append(v.reshape(b, int(np.prod(shp))).astype(pooled_output.dtype))
        pool_supp = pool_supps[0] if len(pool_supps) == 1 else jnp.concatenate(pool_supps, axis=-1)

        pooled_pred = (pooled_output @ self.wx_pooled
                       + pool_supp @ self.ws_pooled
                       + self.b_pooled)

        # Merge head outputs with pass-through batch entries (MultiPredictionHead.forward tail).
        outputs = OrderedDict()
        outputs['token_pred'] = token_pred
        outputs['pooled_pred'] = pooled_pred
        for k in batch:
            if k not in outputs:
                outputs[k] = batch[k]
        return outputs


def _reference(sequence_output, pooled_output, batch, head):
    """Pure-JAX reference matching the PyTorch semantics (eval-mode dropout)."""
    x_seq = sequence_output[-1]
    b, s, c = x_seq.shape
    tok_supp = batch['tok_feat'].reshape(b, s, -1).astype(x_seq.dtype)
    x_tok = jnp.concatenate([x_seq, tok_supp], axis=-1)
    token_pred = x_tok @ head.w_token + head.b_token

    pool_supp = batch['pool_feat'].reshape(b, -1).astype(pooled_output.dtype)
    x_pool = jnp.concatenate([pooled_output, pool_supp], axis=-1)
    pooled_pred = x_pool @ head.w_pooled + head.b_pooled
    return token_pred, pooled_pred


if __name__ == "__main__":
    B, S, H = 2, 8, 32
    NUM_IN_LAYERS = 2          # -> len(sequence_output) == num_in_layers + 1

    key = jax.random.PRNGKey(0)
    k_seq, k_pool, k_tok, k_pfeat, k_params = jax.random.split(key, 5)

    sequence_output = [
        jax.random.normal(jax.random.fold_in(k_seq, i), (B, S, H), jnp.float32)
        for i in range(NUM_IN_LAYERS + 1)
    ]
    pooled_output = jax.random.normal(k_pool, (B, H), jnp.float32)
    batch = OrderedDict(
        tok_feat=jax.random.normal(k_tok, (B, S, 3), jnp.float32),     # token supplement, shape (3,)
        pool_feat=jax.random.normal(k_pfeat, (B, 2, 2), jnp.float32),  # pooled supplement, shape (2, 2)
    )

    head = MultiPredictionHeadPallas(
        in_channels=H,
        num_in_layers=NUM_IN_LAYERS,
        dropout_prob=0.1,
        token_supplemental_key_to_shape=OrderedDict(tok_feat=(3,)),
        pooled_supplemental_key_to_shape=OrderedDict(pool_feat=(2, 2)),
        token_head_out=5,
        pooled_head_out=6,
        key=k_params,
    )

    outputs = head(sequence_output, pooled_output, batch)
    jax.block_until_ready(outputs['token_pred'])
    jax.block_until_ready(outputs['pooled_pred'])

    ref_tok, ref_pool = _reference(sequence_output, pooled_output, batch, head)
    assert outputs['token_pred'].shape == (B, S, 5)
    assert outputs['pooled_pred'].shape == (B, 6)
    np.testing.assert_allclose(np.asarray(outputs['token_pred']), np.asarray(ref_tok),
                               rtol=1e-5, atol=1e-5)
    np.testing.assert_allclose(np.asarray(outputs['pooled_pred']), np.asarray(ref_pool),
                               rtol=1e-5, atol=1e-5)
    assert 'tok_feat' in outputs and 'pool_feat' in outputs  # pass-through batch keys

    print("KERNEL_OK")
</pallas_src>

<mosaic_0001>
module attributes {stable_mosaic.version = 11 : i64} {
  func.func @_fused_supplement_linear_kernel(%arg0: i32, %arg1: memref<16x32xf32, #tpu.memory_space<vmem>>, %arg2: memref<16x3xf32, #tpu.memory_space<vmem>>, %arg3: memref<32x128xf32, #tpu.memory_space<vmem>>, %arg4: memref<3x128xf32, #tpu.memory_space<vmem>>, %arg5: memref<1x128xf32, #tpu.memory_space<vmem>>, %arg6: memref<16x128xf32, #tpu.memory_space<vmem>>) attributes {dimension_semantics = [#tpu.dimension_semantics<parallel>], iteration_bounds = array<i64: 1>, scalar_prefetch = 0 : i64, scratch_operands = 0 : i64, tpu.core_type = #tpu.core_type<tc>, window_params = [{transform_indices = @transform_0, window_bounds = array<i64: 16, 32>}, {transform_indices = @transform_1, window_bounds = array<i64: 16, 3>}, {pipeline_mode = #tpu.pipeline_mode<synchronous>, transform_indices = @transform_2, window_bounds = array<i64: 32, 128>}, {pipeline_mode = #tpu.pipeline_mode<synchronous>, transform_indices = @transform_3, window_bounds = array<i64: 3, 128>}, {pipeline_mode = #tpu.pipeline_mode<synchronous>, transform_indices = @transform_4, window_bounds = array<i64: 1, 128>}, {transform_indices = @transform_5, window_bounds = array<i64: 16, 128>}]} {
    %c0 = arith.constant 0 : index
    %c0_0 = arith.constant 0 : index
    %0 = vector.load %arg1[%c0, %c0_0] : memref<16x32xf32, #tpu.memory_space<vmem>>, vector<16x32xf32>
    %c0_1 = arith.constant 0 : index
    %c0_2 = arith.constant 0 : index
    %1 = vector.load %arg3[%c0_1, %c0_2] : memref<32x128xf32, #tpu.memory_space<vmem>>, vector<32x128xf32>
    %cst = arith.constant dense<0.000000e+00> : vector<16x128xf32>
    %2 = tpu.matmul %0, %1, %cst {dimension_numbers = #tpu.dot_dimension_numbers<[1], [0], [0], [1], [0, 0, 1, 1], [], []>} : vector<16x32xf32>, vector<32x128xf32>, vector<16x128xf32> -> vector<16x128xf32>
    %c0_3 = arith.constant 0 : index
    %c0_4 = arith.constant 0 : index
    %3 = vector.load %arg2[%c0_3, %c0_4] : memref<16x3xf32, #tpu.memory_space<vmem>>, vector<16x3xf32>
    %c0_5 = arith.constant 0 : index
    %c0_6 = arith.constant 0 : index
    %4 = vector.load %arg4[%c0_5, %c0_6] : memref<3x128xf32, #tpu.memory_space<vmem>>, vector<3x128xf32>
    %5 = vector.extract_strided_slice %3 {offsets = [0, 0], sizes = [16, 1], strides = [1, 1]} : vector<16x3xf32> to vector<16x1xf32>
    %6 = vector.extract_strided_slice %4 {offsets = [0, 0], sizes = [1, 128], strides = [1, 1]} : vector<3x128xf32> to vector<1x128xf32>
    %7 = vector.broadcast %5 : vector<16x1xf32> to vector<16x128xf32>
    %8 = vector.broadcast %6 : vector<1x128xf32> to vector<16x128xf32>
    %9 = arith.mulf %7, %8 : vector<16x128xf32>
    %10 = arith.addf %2, %9 : vector<16x128xf32>
    %11 = vector.extract_strided_slice %3 {offsets = [0, 1], sizes = [16, 1], strides = [1, 1]} : vector<16x3xf32> to vector<16x1xf32>
    %12 = vector.extract_strided_slice %4 {offsets = [1, 0], sizes = [1, 128], strides = [1, 1]} : vector<3x128xf32> to vector<1x128xf32>
    %13 = vector.broadcast %11 : vector<16x1xf32> to vector<16x128xf32>
    %14 = vector.broadcast %12 : vector<1x128xf32> to vector<16x128xf32>
    %15 = arith.mulf %13, %14 : vector<16x128xf32>
    %16 = arith.addf %10, %15 : vector<16x128xf32>
    %17 = vector.extract_strided_slice %3 {offsets = [0, 2], sizes = [16, 1], strides = [1, 1]} : vector<16x3xf32> to vector<16x1xf32>
    %18 = vector.extract_strided_slice %4 {offsets = [2, 0], sizes = [1, 128], strides = [1, 1]} : vector<3x128xf32> to vector<1x128xf32>
    %19 = vector.broadcast %17 : vector<16x1xf32> to vector<16x128xf32>
    %20 = vector.broadcast %18 : vector<1x128xf32> to vector<16x128xf32>
    %21 = arith.mulf %19, %20 : vector<16x128xf32>
    %22 = arith.addf %16, %21 : vector<16x128xf32>
    %c0_7 = arith.constant 0 : index
    %c0_8 = arith.constant 0 : index
    %23 = vector.load %arg5[%c0_7, %c0_8] : memref<1x128xf32, #tpu.memory_space<vmem>>, vector<1x128xf32>
    %24 = vector.broadcast %23 : vector<1x128xf32> to vector<16x128xf32>
    %25 = arith.addf %22, %24 : vector<16x128xf32>
    %c0_9 = arith.constant 0 : index
    %c0_10 = arith.constant 0 : index
    %26 = vector.load %arg6[%c0_9, %c0_10] : memref<16x128xf32, #tpu.memory_space<vmem>>, vector<16x128xf32>
    tpu.vector_store %arg6[%c0_9, %c0_10], %25 {strides = array<i32>} : memref<16x128xf32, #tpu.memory_space<vmem>>, vector<16x128xf32>,
    return
  }
  func.func @transform_0(%arg0: i32) -> (i32, i32) {
    %c0_i32 = arith.constant 0 : i32
    %c0_i32_0 = arith.constant 0 : i32
    return %arg0, %c0_i32 : i32, i32
  }
  func.func @transform_1(%arg0: i32) -> (i32, i32) {
    %c0_i32 = arith.constant 0 : i32
    %c0_i32_0 = arith.constant 0 : i32
    return %arg0, %c0_i32 : i32, i32
  }
  func.func @transform_2(%arg0: i32) -> (i32, i32) {
    %c0_i32 = arith.constant 0 : i32
    %c0_i32_0 = arith.constant 0 : i32
    %c0_i32_1 = arith.constant 0 : i32
    return %c0_i32, %c0_i32_0 : i32, i32
  }
  func.func @transform_3(%arg0: i32) -> (i32, i32) {
    %c0_i32 = arith.constant 0 : i32
    %c0_i32_0 = arith.constant 0 : i32
    %c0_i32_1 = arith.constant 0 : i32
    return %c0_i32, %c0_i32_0 : i32, i32
  }
  func.func @transform_4(%arg0: i32) -> (i32, i32) {
    %c0_i32 = arith.constant 0 : i32
    %c0_i32_0 = arith.constant 0 : i32
    %c0_i32_1 = arith.constant 0 : i32
    return %c0_i32, %c0_i32_0 : i32, i32
  }
  func.func @transform_5(%arg0: i32) -> (i32, i32) {
    %c0_i32 = arith.constant 0 : i32
    %c0_i32_0 = arith.constant 0 : i32
    return %arg0, %c0_i32 : i32, i32
  }
}

</mosaic_0001>

<bundles_post_ra>
// kernel: tpu_custom_call.1
= control target key start
LH: loop header
LB: loop body
LE: loop exit
PB: predicated region body
PF: predicated region fallthrough
CT: control target
= control target key end

     0   :  { %10 = vsyncpa [#allocation3], 0  ;;  %s279_s0 = inlined_call_operand.vmem [shape: f32[16,32], index: 0, kind: input, shape index: {}]   ;;  %s280_s1 = inlined_call_operand.vmem [shape: f32[16,3], index: 1, kind: input, shape index: {}]   ;;  %s281_s2 = inlined_call_operand.hbm [shape: f32[32,128], index: 2, kind: input, shape index: {}]   ;;  %s282_s3 = inlined_call_operand.vmem [shape: f32[3,128], index: 3, kind: input, shape index: {}]   ;;  %s283_s4 = inlined_call_operand.vmem [shape: f32[1,128], index: 4, kind: input, shape index: {}]   ;;  %s284_s5 = inlined_call_operand.hbm [shape: f32[16,128], index: 5, kind: output, shape index: {}]  }
   0x1   :  { %11 = vsyncpa [#allocation4], 0  ;;  %s20_s20 = sshll.u32 %s281_s2, 4  ;;  %s212_s21 = smov [#allocation2]   ;;  %s21_s20 = int_to_ptr.hbm [resolvable:$true] %s20_s20 }
   0x2   :  { %s22_s22 = sshll.u32 %s212_s21, 4  ;;  %s213_s23 = smov 128   ;;  %s23_s22 = int_to_ptr.vmem [resolvable:$true] %s22_s22 }
   0x3   :  { %s214_s24 = smov 8  }
   0x4   :  { %28 = dma.hbm_to_vmem [thread:$0]  %s21_s20, 512, %s23_s22, [#allocation3], %s213_s23, %s213_s23, %s214_s24  }
   0x5   :  { %208 = dma.done.wait [#allocation3], 512  }
   0x6   :  { %209 = vsyncadd [#allocation3], 4294966784  ;;  %v215_v0 = vmov 0   ;;  %v216_v1 = vmov 1   ;;  %v217_v2 = vmov 2   ;;  %v43_v3 = vld [vmem:[%s280_s1] sm:$0xff] }
   0x7   :  { %155 = vset.pattern.permute.xlu0 %v215_v0  ;;  %156 = vset.pattern.permute.xlu1 %v216_v1  ;;  %v42_v4 = vld [vmem:[#allocation2 + $0x18] sm:$0xff]  ;;  %v41_v5 = vld [vmem:[#allocation2 + $0x10] sm:$0xff]  ;;  %v40_v6 = vld [vmem:[#allocation2 + $0x8] sm:$0xff]  ;;  %vm59_vm0 = vcmask 261120   ;;  %s129_s12 = sshll.u32 %s284_s5, 4  ;;  %s130_s12 = int_to_ptr.hbm [resolvable:$true] %s129_s12 }
   0x8   :  { %157 = vset.pattern.permute.xlu2 %v217_v2  ;;  %48 = vperm.xlu0 %155, %v43_v3   ;;  %v39_v7 = vld [vmem:[#allocation2] sm:$0xff]  ;;  %v38_v9 = vld [vmem:[%s279_s0 + $0x8] sm:$0xff] }
   0x9   :  { %78 = vmatpush.msra.mxu0 %v42_v4  ;;  %144 = vmatpush.msra.mxu1 %v42_v4  ;;  %v37_v8 = vld [vmem:[%s279_s0] sm:$0xff]  ;;  %v44_v10 = vld [vmem:[%s280_s1 + $0x8] sm:$0xff] }
   0xa   :  { %90 = vperm.xlu1 %156, %v43_v3   ;;  %103 = vperm.xlu2 %157, %v43_v3   ;;  %v45_v14 = vld [vmem:[%s282_s3] sm:$0x7]  ;;  %s218_s3 = smov [#allocation5]  }
   0xb   :  { %79 = vmatpush.msra.mxu0 %v41_v5  ;;  %145 = vmatpush.msra.mxu1 %v41_v5  ;;  %v56_v15 = vperm.slane %v45_v14, 0  ;;  %v97_v16 = vperm.slane %v45_v14, 1  ;;  %v110_v19 = vperm.slane %v45_v14, 2  ;;  %v159_v31 = vld [vmem:[%s283_s4] ss:$0 sm:$0xff]  ;;  %s127_s9 = sshll.u32 %s218_s3, 4  ;;  %s128_s9 = int_to_ptr.vmem [resolvable:$true] %s127_s9 }
   0xd   :  { %80 = vmatpush.msra.mxu0 %v40_v6  ;;  %146 = vmatpush.msra.mxu1 %v40_v6 }
   0xf   :  { %81 = vmatpush.msra.mxu0 %v39_v7  ;;  %147 = vmatpush.msra.mxu1 %v39_v7 }
  0x10   :  { %142 = vmatmul.msk.f32.vlgmr.msra.gmra.mxu0 %vm59_vm0, %v37_v8  ;;  %143 = vmatmul.msk.f32.vlgmr.msra.gmra.mxu1 %vm59_vm0, %v38_v9 }
  0x11   :  { %53 = vperm.xlu0 %155, %v44_v10  }
  0x12   :  { %94 = vperm.xlu1 %156, %v44_v10   ;;  %107 = vperm.xlu2 %157, %v44_v10  }
  0x19   :  { %158 = vset.pattern.permute.xlu0 %v217_v2 }
  0x64   :  { %v104_v13 = vpop.permute.xlu2 %103 }
  0x65   :  { %v111_v29 = vmul.f32 %v110_v19, %v104_v13 }
  0x6c   :  { %v108_v24 = vpop.permute.xlu2 %107 }
  0x6d   :  { %v112_v32 = vmul.f32 %v110_v19, %v108_v24 }
  0x7a   :  { %v49_v11 = vpop.permute.xlu0 %48 }
  0x7b   :  { %v57_v18 = vmul.f32 %v56_v15, %v49_v11 }
  0x7c   :  { %v91_v12 = vpop.permute.xlu1 %90 }
  0x7d   :  { %v98_v23 = vmul.f32 %v97_v16, %v91_v12 }
  0x83   :  { %v54_v17 = vpop.permute.xlu0 %53 }
  0x84   :  { %v95_v20 = vpop.permute.xlu1 %94  ;;  %v58_v21 = vmul.f32 %v56_v15, %v54_v17 }
  0x85   :  { %v99_v27 = vmul.f32 %v97_v16, %v95_v20 }
  0x8d   :  { %v83_v22 = vpop.f32.mrf.mxu0  ;;  %v86_v26 = vpop.f32.mrf.mxu1 }
  0x8e   :  { %v84_v25 = vadd.f32 %v83_v22, %v57_v18  ;;  %v87_v28 = vadd.f32 %v86_v26, %v58_v21 }
  0x90   :  { %v100_v30 = vadd.f32 %v98_v23, %v84_v25  ;;  %v101_v33 = vadd.f32 %v99_v27, %v87_v28 }
  0x92   :  { %v113_v34 = vadd.f32 %v111_v29, %v100_v30  ;;  %v114_v35 = vadd.f32 %v112_v32, %v101_v33 }
  0x94   :  { %v119_v36 = vadd.f32 %v159_v31, %v113_v34  ;;  %v120_v37 = vadd.f32 %v159_v31, %v114_v35 }
  0x96   :  { %121 = vst [vmem:[#allocation5] sm:$0xff] %v119_v36 }
  0x97   :  { %122 = vst [vmem:[#allocation5 + $0x8] sm:$0xff] %v120_v37 }
  0x98   :  { %135 = dma.vmem_to_hbm [thread:$0]  %s128_s9, 256, %s130_s12, [#allocation4], %s213_s23, %s213_s23, %s214_s24  }
  0x99   :  { %210 = dma.done.wait [#allocation4], 256  }
  0x9a   :  { %211 = vsyncadd [#allocation4], 4294967040 }
  0x9b   :  { %140 = vsyncpa [#allocation3], 1 }
  0x9c   :  { %141 = vsyncpa [#allocation4], 1 }

</bundles_post_ra>
